<compile_context>
chip_gen: v5e
topology: v5e:2x2
jax: 0.10.0
libtpu: 0.0.40
codegen_flags: <defaults>
</compile_context>

<pallas_src>
import jax
import jax.numpy as jnp
from jax.experimental import pallas as pl
from jax.experimental.pallas import tpu as pltpu

_LANE = 128
_SUB = 8  # f32 sublanes per vreg


def _vmem_capacity_bytes():
    try:
        return int(pltpu.get_tpu_info().vmem_capacity_bytes)
    except Exception:
        return 64 * 1024 * 1024  # conservative (v7x-sized) fallback


def _make_kernel(B, s_tile, inner_blocks, n_blocks, s_valid, need_mask):
    """Streaming multiply-accumulate over the feature axis.

    Refs:
      a_ref/p_ref/n_ref: (B, s_tile, 128) input tiles.
      out_ref:           (1, 5*B, 8, 128) resident partial-sum accumulator
                         (q-minor order: row b*5+q), reduced in the wrapper.
    """

    def kernel(a_ref, p_ref, n_ref, out_ref):
        k = pl.program_id(1)

        @pl.when(k == 0)
        def _init():
            out_ref[...] = jnp.zeros_like(out_ref)

        a = a_ref[...].astype(jnp.float32)
        p = p_ref[...].astype(jnp.float32)
        n = n_ref[...].astype(jnp.float32)

        if need_mask:
            # Guard rows read past the array extent (ragged block tail) and
            # duplicated clamped blocks on the odd-split TensorCore.
            blk = pl.program_id(0) * inner_blocks + k
            base = jnp.minimum(blk, n_blocks - 1) * s_tile
            rows = base + jax.lax.broadcasted_iota(
                jnp.int32, (B, s_tile, _LANE), 1
            )
            valid = (rows < s_valid) & (blk < n_blocks)
            zero = jnp.zeros_like(a)
            a = jnp.where(valid, a, zero)
            p = jnp.where(valid, p, zero)
            n = jnp.where(valid, n, zero)

        chunks = s_tile // _SUB

        def part(x, y):
            # (B, s_tile, 128) -> (B, chunks, 8, 128) is tile-aligned (free);
            # summing the chunk axis is whole-vreg VALU adds, no XLU.
            prod = (x * y).reshape(B, chunks, _SUB, _LANE)
            return jnp.sum(prod, axis=1)  # (B, 8, 128)

        upd = jnp.stack(
            [part(a, p), part(a, n), part(a, a), part(p, p), part(n, n)],
            axis=1,
        )  # (B, 5, 8, 128)
        # Single contiguous, unmasked full-lane accumulate per step.
        out_ref[...] += upd.reshape(1, 5 * B, _SUB, _LANE)

    return kernel


def triplet_distance(anchors, positives, negatives, margin):
    """Returns (loss_sum, sim_pos, sim_neg) matching the PyTorch module."""
    B = anchors.shape[0]
    a2d = anchors.reshape(B, -1)
    p2d = positives.reshape(B, -1)
    n2d = negatives.reshape(B, -1)
    D = a2d.shape[1]
    itemsize = jnp.dtype(a2d.dtype).itemsize

    # ---- layout: (B, S, 128) so every vreg is sublane-dense for B=2 rows.
    sub = max(_SUB, 32 // itemsize)      # sublane packing unit for input dtype
    S = pl.cdiv(D, _LANE)
    if S < sub:
        S = sub
    d_pad = S * _LANE
    # TODO(synk): when D % 128 != 0 the pad below is an extra HBM pass over the
    # inputs; a fully ragged-D path would lane-mask in-kernel on a 2-D layout
    # instead (at the cost of sublane density). No-op for D % 128 == 0.

    def prep(x):
        if d_pad != D:
            x = jnp.pad(x, ((0, 0), (0, d_pad - D)))  # zeros: exact for dots/norms
        return x.reshape(B, S, _LANE)                  # free reshape when no pad

    a3, p3, n3 = prep(a2d), prep(p2d), prep(n2d)

    # ---- per-generation tile budget (3 inputs x 2 pipeline buffers).
    vmem_cap = _vmem_capacity_bytes()
    if vmem_cap >= 96 * 1024 * 1024:      # v5e / v6e: 128 MiB physical VMEM
        budget = 16 * 1024 * 1024
        vmem_limit = 64 * 1024 * 1024
    else:                                 # v7x: 64 MiB physical VMEM
        budget = 8 * 1024 * 1024
        vmem_limit = 32 * 1024 * 1024
    max_rows = max(sub, budget // (3 * 2 * B * _LANE * itemsize))
    s_tile = max(sub, (min(S, max_rows) // sub) * sub)

    n_blocks = pl.cdiv(S, s_tile)
    # Split the reduction across both TensorCores on v7x; a loop elsewhere.
    num_splits = 2 if n_blocks >= 2 else 1
    inner_blocks = pl.cdiv(n_blocks, num_splits)
    clamp = num_splits * inner_blocks > n_blocks
    need_mask = num_splits * inner_blocks * s_tile > S
    vmem_limit = max(vmem_limit, 3 * 2 * B * s_tile * _LANE * itemsize + (8 << 20))

    def tile_map(c, k):
        b = c * inner_blocks + k
        if clamp:
            b = jnp.minimum(b, n_blocks - 1)
        return (0, b, 0)

    tile_spec = pl.BlockSpec((B, s_tile, _LANE), tile_map)

    out = pl.pallas_call(
        _make_kernel(B, s_tile, inner_blocks, n_blocks, S, need_mask),
        out_shape=jax.ShapeDtypeStruct(
            (num_splits, 5 * B, _SUB, _LANE), jnp.float32
        ),
        grid=(num_splits, inner_blocks),
        in_specs=[tile_spec, tile_spec, tile_spec],
        out_specs=pl.BlockSpec(
            (1, 5 * B, _SUB, _LANE), lambda c, k: (c, 0, 0, 0)
        ),
        compiler_params=pltpu.CompilerParams(
            dimension_semantics=("parallel", "arbitrary"),
            vmem_limit_bytes=vmem_limit,
        ),
    )(a3, p3, n3)

    # ---- tiny finalize in plain XLA: combine per-core partials, reduce lanes.
    sums = out.reshape(num_splits, B, 5, _SUB * _LANE).sum(axis=(0, 3))  # (B, 5)
    dot_ap = sums[:, 0]
    dot_an = sums[:, 1]
    aa = sums[:, 2]
    pp = sums[:, 3]
    nn_ = sums[:, 4]

    sim_pos = dot_ap / (jnp.sqrt(aa) * jnp.sqrt(pp))
    sim_neg = dot_an / (jnp.sqrt(aa) * jnp.sqrt(nn_))
    losses = jnp.maximum(-sim_pos + sim_neg + jnp.float32(margin), 0.0)
    return losses.sum(), sim_pos, sim_neg


def _reference(anchors, positives, negatives, margin):
    B = anchors.shape[0]
    a = anchors.reshape(B, -1).astype(jnp.float32)
    p = positives.reshape(B, -1).astype(jnp.float32)
    n = negatives.reshape(B, -1).astype(jnp.float32)
    sim_pos = jnp.sum(a * p, 1) / (
        jnp.sqrt(jnp.sum(a * a, 1)) * jnp.sqrt(jnp.sum(p * p, 1))
    )
    sim_neg = jnp.sum(a * n, 1) / (
        jnp.sqrt(jnp.sum(a * a, 1)) * jnp.sqrt(jnp.sum(n * n, 1))
    )
    losses = jnp.maximum(-sim_pos + sim_neg + margin, 0.0)
    return losses.sum(), sim_pos, sim_neg


if __name__ == "__main__":
    margin = 0.2  # module "parameter" set deterministically in-script

    key = jax.random.PRNGKey(0)
    k1, k2, k3 = jax.random.split(key, 3)
    # NCHW inputs as the PyTorch module would receive them (flattened inside).
    anchors = jax.random.normal(k1, (2, 4, 16, 16), dtype=jnp.float32)
    positives = jax.random.normal(k2, (2, 4, 16, 16), dtype=jnp.float32)
    negatives = jax.random.normal(k3, (2, 4, 16, 16), dtype=jnp.float32)

    loss, sim_pos, sim_neg = triplet_distance(anchors, positives, negatives, margin)
    jax.block_until_ready((loss, sim_pos, sim_neg))

    ref_loss, ref_sp, ref_sn = _reference(anchors, positives, negatives, margin)
    assert jnp.allclose(loss, ref_loss, atol=1e-5, rtol=1e-5)
    assert jnp.allclose(sim_pos, ref_sp, atol=1e-5, rtol=1e-5)
    assert jnp.allclose(sim_neg, ref_sn, atol=1e-5, rtol=1e-5)

    print("KERNEL_OK")
</pallas_src>

<mosaic_0001>
module attributes {stable_mosaic.version = 11 : i64} {
  func.func @kernel(%arg0: i32, %arg1: i32, %arg2: memref<2x8x128xf32, #tpu.memory_space<vmem>>, %arg3: memref<2x8x128xf32, #tpu.memory_space<vmem>>, %arg4: memref<2x8x128xf32, #tpu.memory_space<vmem>>, %arg5: memref<1x10x8x128xf32, #tpu.memory_space<vmem>>) attributes {dimension_semantics = [#tpu.dimension_semantics<parallel>, #tpu.dimension_semantics<arbitrary>], iteration_bounds = array<i64: 1, 1>, scalar_prefetch = 0 : i64, scratch_operands = 0 : i64, tpu.core_type = #tpu.core_type<tc>, window_params = [{transform_indices = @transform_0, window_bounds = array<i64: 2, 8, 128>}, {transform_indices = @transform_1, window_bounds = array<i64: 2, 8, 128>}, {transform_indices = @transform_2, window_bounds = array<i64: 2, 8, 128>}, {transform_indices = @transform_3, window_bounds = array<i64: 1, 10, 8, 128>}]} {
    %c0_i32 = arith.constant 0 : i32
    %0 = arith.cmpi eq, %arg1, %c0_i32 : i32
    %1 = arith.extui %0 : i1 to i32
    %c0_i32_0 = arith.constant 0 : i32
    %2 = arith.cmpi ne, %1, %c0_i32_0 : i32
    scf.if %2 {
      %cst_21 = arith.constant 0.000000e+00 : f32
      %31 = vector.broadcast %cst_21 : f32 to vector<1x10x8x128xf32>
      %c0_22 = arith.constant 0 : index
      %c0_23 = arith.constant 0 : index
      %c0_24 = arith.constant 0 : index
      %c0_25 = arith.constant 0 : index
      %32 = vector.load %arg5[%c0_22, %c0_23, %c0_24, %c0_25] : memref<1x10x8x128xf32, #tpu.memory_space<vmem>>, vector<1x10x8x128xf32>
      tpu.vector_store %arg5[%c0_22, %c0_23, %c0_24, %c0_25], %31 {strides = array<i32>} : memref<1x10x8x128xf32, #tpu.memory_space<vmem>>, vector<1x10x8x128xf32>,
    } else {
    }
    %c0 = arith.constant 0 : index
    %c0_1 = arith.constant 0 : index
    %c0_2 = arith.constant 0 : index
    %3 = vector.load %arg2[%c0, %c0_1, %c0_2] : memref<2x8x128xf32, #tpu.memory_space<vmem>>, vector<2x8x128xf32>
    %c0_3 = arith.constant 0 : index
    %c0_4 = arith.constant 0 : index
    %c0_5 = arith.constant 0 : index
    %4 = vector.load %arg3[%c0_3, %c0_4, %c0_5] : memref<2x8x128xf32, #tpu.memory_space<vmem>>, vector<2x8x128xf32>
    %c0_6 = arith.constant 0 : index
    %c0_7 = arith.constant 0 : index
    %c0_8 = arith.constant 0 : index
    %5 = vector.load %arg4[%c0_6, %c0_7, %c0_8] : memref<2x8x128xf32, #tpu.memory_space<vmem>>, vector<2x8x128xf32>
    %6 = arith.mulf %3, %4 : vector<2x8x128xf32>
    %7 = vector.shape_cast %6 : vector<2x8x128xf32> to vector<2x1x8x128xf32>
    %cst = arith.constant dense<0.000000e+00> : vector<2x8x128xf32>
    %8 = vector.multi_reduction <add>, %7, %cst [1] : vector<2x1x8x128xf32> to vector<2x8x128xf32>
    %9 = arith.mulf %3, %5 : vector<2x8x128xf32>
    %10 = vector.shape_cast %9 : vector<2x8x128xf32> to vector<2x1x8x128xf32>
    %cst_9 = arith.constant dense<0.000000e+00> : vector<2x8x128xf32>
    %11 = vector.multi_reduction <add>, %10, %cst_9 [1] : vector<2x1x8x128xf32> to vector<2x8x128xf32>
    %12 = arith.mulf %3, %3 : vector<2x8x128xf32>
    %13 = vector.shape_cast %12 : vector<2x8x128xf32> to vector<2x1x8x128xf32>
    %cst_10 = arith.constant dense<0.000000e+00> : vector<2x8x128xf32>
    %14 = vector.multi_reduction <add>, %13, %cst_10 [1] : vector<2x1x8x128xf32> to vector<2x8x128xf32>
    %15 = arith.mulf %4, %4 : vector<2x8x128xf32>
    %16 = vector.shape_cast %15 : vector<2x8x128xf32> to vector<2x1x8x128xf32>
    %cst_11 = arith.constant dense<0.000000e+00> : vector<2x8x128xf32>
    %17 = vector.multi_reduction <add>, %16, %cst_11 [1] : vector<2x1x8x128xf32> to vector<2x8x128xf32>
    %18 = arith.mulf %5, %5 : vector<2x8x128xf32>
    %19 = vector.shape_cast %18 : vector<2x8x128xf32> to vector<2x1x8x128xf32>
    %cst_12 = arith.constant dense<0.000000e+00> : vector<2x8x128xf32>
    %20 = vector.multi_reduction <add>, %19, %cst_12 [1] : vector<2x1x8x128xf32> to vector<2x8x128xf32>
    %21 = vector.shape_cast %8 : vector<2x8x128xf32> to vector<2x1x8x128xf32>
    %22 = vector.shape_cast %11 : vector<2x8x128xf32> to vector<2x1x8x128xf32>
    %23 = vector.shape_cast %14 : vector<2x8x128xf32> to vector<2x1x8x128xf32>
    %24 = vector.shape_cast %17 : vector<2x8x128xf32> to vector<2x1x8x128xf32>
    %25 = vector.shape_cast %20 : vector<2x8x128xf32> to vector<2x1x8x128xf32>
    %26 = tpu.concatenate %21, %22, %23, %24, %25 in 1 : vector<2x1x8x128xf32>, vector<2x1x8x128xf32>, vector<2x1x8x128xf32>, vector<2x1x8x128xf32>, vector<2x1x8x128xf32> -> vector<2x5x8x128xf32>
    %c0_13 = arith.constant 0 : index
    %c0_14 = arith.constant 0 : index
    %c0_15 = arith.constant 0 : index
    %c0_16 = arith.constant 0 : index
    %27 = vector.load %arg5[%c0_13, %c0_14, %c0_15, %c0_16] : memref<1x10x8x128xf32, #tpu.memory_space<vmem>>, vector<1x10x8x128xf32>
    %28 = vector.shape_cast %26 : vector<2x5x8x128xf32> to vector<1x10x8x128xf32>
    %29 = arith.addf %27, %28 : vector<1x10x8x128xf32>
    %c0_17 = arith.constant 0 : index
    %c0_18 = arith.constant 0 : index
    %c0_19 = arith.constant 0 : index
    %c0_20 = arith.constant 0 : index
    %30 = vector.load %arg5[%c0_17, %c0_18, %c0_19, %c0_20] : memref<1x10x8x128xf32, #tpu.memory_space<vmem>>, vector<1x10x8x128xf32>
    tpu.vector_store %arg5[%c0_17, %c0_18, %c0_19, %c0_20], %29 {strides = array<i32>} : memref<1x10x8x128xf32, #tpu.memory_space<vmem>>, vector<1x10x8x128xf32>,
    return
  }
  func.func @transform_0(%arg0: i32, %arg1: i32) -> (i32, i32, i32) {
    %c1_i32 = arith.constant 1 : i32
    %0 = arith.muli %arg0, %c1_i32 : i32
    %1 = arith.addi %0, %arg1 : i32
    %c0_i32 = arith.constant 0 : i32
    %c0_i32_0 = arith.constant 0 : i32
    %c0_i32_1 = arith.constant 0 : i32
    return %c0_i32, %1, %c0_i32_0 : i32, i32, i32
  }
  func.func @transform_1(%arg0: i32, %arg1: i32) -> (i32, i32, i32) {
    %c1_i32 = arith.constant 1 : i32
    %0 = arith.muli %arg0, %c1_i32 : i32
    %1 = arith.addi %0, %arg1 : i32
    %c0_i32 = arith.constant 0 : i32
    %c0_i32_0 = arith.constant 0 : i32
    %c0_i32_1 = arith.constant 0 : i32
    return %c0_i32, %1, %c0_i32_0 : i32, i32, i32
  }
  func.func @transform_2(%arg0: i32, %arg1: i32) -> (i32, i32, i32) {
    %c1_i32 = arith.constant 1 : i32
    %0 = arith.muli %arg0, %c1_i32 : i32
    %1 = arith.addi %0, %arg1 : i32
    %c0_i32 = arith.constant 0 : i32
    %c0_i32_0 = arith.constant 0 : i32
    %c0_i32_1 = arith.constant 0 : i32
    return %c0_i32, %1, %c0_i32_0 : i32, i32, i32
  }
  func.func @transform_3(%arg0: i32, %arg1: i32) -> (i32, i32, i32, i32) {
    %c0_i32 = arith.constant 0 : i32
    %c0_i32_0 = arith.constant 0 : i32
    %c0_i32_1 = arith.constant 0 : i32
    %c0_i32_2 = arith.constant 0 : i32
    return %arg0, %c0_i32, %c0_i32_0, %c0_i32_1 : i32, i32, i32, i32
  }
}

</mosaic_0001>

<bundles_post_ra>
// kernel: tpu_custom_call.1
= control target key start
LH: loop header
LB: loop body
LE: loop exit
PB: predicated region body
PF: predicated region fallthrough
CT: control target
= control target key end

     0   :  { %8 = vsyncpa [#allocation3], 0  ;;  %s323_s0 = inlined_call_operand.hbm [shape: f32[2,8,128], index: 0, kind: input, shape index: {}]   ;;  %s324_s1 = inlined_call_operand.hbm [shape: f32[2,8,128], index: 1, kind: input, shape index: {}]   ;;  %s325_s2 = inlined_call_operand.hbm [shape: f32[2,8,128], index: 2, kind: input, shape index: {}]   ;;  %s326_s3 = inlined_call_operand.hbm [shape: f32[1,10,8,128], index: 3, kind: output, shape index: {}]  }
   0x1   :  { %9 = vsyncpa [#allocation6], 0 }
   0x2   :  { %10 = vsyncpa [#allocation4], 0  ;;  %s34_s14 = sshll.u32 %s324_s1, 4  ;;  %s273_s15 = smov [#allocation5]   ;;  %s35_s14 = int_to_ptr.hbm [resolvable:$true] %s34_s14 }
   0x3   :  { %s36_s16 = sshll.u32 %s273_s15, 4  ;;  %s18_s19 = sshll.u32 %s323_s0, 4  ;;  %s37_s16 = int_to_ptr.vmem [resolvable:$true] %s36_s16  ;;  %s19_s19 = int_to_ptr.hbm [resolvable:$true] %s18_s19 }
   0x4   :  { %s274_s20 = smov 128   ;;  %s275_s21 = smov 8  }
   0x5   :  { %42 = dma.hbm_to_vmem [thread:$0]  %s35_s14, 256, %s37_s16, [#allocation6], %s274_s20, %s274_s20, %s275_s21  }
   0x6   :  { %s276_s22 = smov [#allocation2]   ;;  %s50_s1 = sshll.u32 %s325_s2, 4  ;;  %s51_s1 = int_to_ptr.hbm [resolvable:$true] %s50_s1 }
   0x7   :  { %s20_s23 = sshll.u32 %s276_s22, 4  ;;  %s277_s0 = smov [#allocation7]   ;;  %s21_s23 = int_to_ptr.vmem [resolvable:$true] %s20_s23 }
   0x8   :  { %26 = dma.hbm_to_vmem [thread:$0]  %s19_s19, 256, %s21_s23, [#allocation3], %s274_s20, %s274_s20, %s275_s21  }
   0x9   :  { %s52_s26 = sshll.u32 %s277_s0, 4  ;;  %s53_s26 = int_to_ptr.vmem [resolvable:$true] %s52_s26 }
   0xa   :  { %58 = dma.hbm_to_vmem [thread:$0]  %s51_s1, 256, %s53_s26, [#allocation6], %s274_s20, %s274_s20, %s275_s21  }
   0xb   :  { %267 = dma.done.wait [#allocation3], 256  }
   0xc   :  { %268 = vsyncadd [#allocation3], 4294967040 }
   0xd   :  { %269 = dma.done.wait [#allocation6], 512  }
   0xe   :  { %270 = vsyncadd [#allocation6], 4294966784  ;;  %v88_v0 = vld [vmem:[#allocation2] sm:$0xff]  ;;  %v90_v1 = vld [vmem:[#allocation5] sm:$0xff]  ;;  %s278_s2 = smov [#allocation8]   ;;  %s150_s30 = sshll.u32 %s326_s3, 4  ;;  %s151_s30 = int_to_ptr.hbm [resolvable:$true] %s150_s30 }
   0xf   :  { %v92_v2 = vld [vmem:[#allocation7] sm:$0xff]  ;;  %v94_v3 = vmul.f32 %v90_v1, %v88_v0  ;;  %v102_v5 = vmul.f32 %v88_v0, %v88_v0  ;;  %v106_v6 = vmul.f32 %v90_v1, %v90_v1  ;;  %v89_v7 = vld [vmem:[#allocation2 + $0x8] sm:$0xff]  ;;  %v91_v8 = vld [vmem:[#allocation5 + $0x8] sm:$0xff]  ;;  %s148_s27 = sshll.u32 %s278_s2, 4  ;;  %s149_s27 = int_to_ptr.vmem [resolvable:$true] %s148_s27 }
  0x10   :  { %v98_v4 = vmul.f32 %v92_v2, %v88_v0  ;;  %v93_v9 = vld [vmem:[#allocation7 + $0x8] sm:$0xff]  ;;  %v110_v10 = vmul.f32 %v92_v2, %v92_v2  ;;  %v95_v11 = vmul.f32 %v91_v8, %v89_v7  ;;  %v103_v13 = vmul.f32 %v89_v7, %v89_v7 }
  0x11   :  { %v99_v12 = vmul.f32 %v93_v9, %v89_v7  ;;  %134 = vst [vmem:[#allocation8] sm:$0xff] %v94_v3  ;;  %v107_v14 = vmul.f32 %v91_v8, %v91_v8  ;;  %v111_v15 = vmul.f32 %v93_v9, %v93_v9 }
  0x12   :  { %135 = vst [vmem:[#allocation8 + $0x8] sm:$0xff] %v98_v4 }
  0x13   :  { %136 = vst [vmem:[#allocation8 + $0x10] sm:$0xff] %v102_v5 }
  0x14   :  { %137 = vst [vmem:[#allocation8 + $0x18] sm:$0xff] %v106_v6 }
  0x15   :  { %138 = vst [vmem:[#allocation8 + $0x20] sm:$0xff] %v110_v10 }
  0x16   :  { %139 = vst [vmem:[#allocation8 + $0x28] sm:$0xff] %v95_v11 }
  0x17   :  { %140 = vst [vmem:[#allocation8 + $0x30] sm:$0xff] %v99_v12 }
  0x18   :  { %141 = vst [vmem:[#allocation8 + $0x38] sm:$0xff] %v103_v13 }
  0x19   :  { %142 = vst [vmem:[#allocation8 + $0x40] sm:$0xff] %v107_v14 }
  0x1a   :  { %143 = vst [vmem:[#allocation8 + $0x48] sm:$0xff] %v111_v15 }
  0x1b   :  { %156 = dma.vmem_to_hbm [thread:$0]  %s149_s27, 1280, %s151_s30, [#allocation4], %s274_s20, %s274_s20, %s275_s21  }
  0x1c   :  { %271 = dma.done.wait [#allocation4], 1280  }
  0x1d   :  { %272 = vsyncadd [#allocation4], 4294966016 }
  0x1e   :  { %161 = vsyncpa [#allocation3], 1 }
  0x1f   :  { %162 = vsyncpa [#allocation6], 1 }
  0x20   :  { %163 = vsyncpa [#allocation4], 1 }

</bundles_post_ra>
